<compile_context>
chip_gen: v5e
topology: v5e:2x2
jax: 0.10.0
libtpu: 0.0.40
codegen_flags: <defaults>
</compile_context>

<pallas_src>
import functools

import jax
import jax.numpy as jnp
from jax import lax
from jax.experimental import pallas as pl
from jax.experimental.pallas import tpu as pltpu


def _round_up(x, m):
    return (x + m - 1) // m * m


def _pick_tile(total, max_tile):
    """Largest sublane-friendly (multiple-of-8) tile <= max_tile that divides
    `total`; falls back to the full extent."""
    t = min(max_tile, total)
    if t == total:
        return t
    t -= t % 8
    while t >= 8:
        if total % t == 0:
            return t
        t -= 8
    return total


def _vmem_limit(estimate_bytes):
    # >= the 32 MiB v6e/v7x scoped default, generous 2x margin over the static
    # estimate, capped well below physical VMEM (64 MiB on v7x is the floor).
    return int(min(max(2 * estimate_bytes + (4 << 20), 32 << 20), 100 << 20))


# --------------------------------------------------------------------------
# Kernel 1: fused QKV projection  (rows = b*n, one big MXU matmul per step)
# --------------------------------------------------------------------------
def _qkv_proj_kernel(x_ref, w_ref, b_ref, q_ref, k_ref, v_ref, *, d_pad):
    # x_ref: (R_TILE, d_pad) bf16, w_ref: (d_pad, 3*d_pad) bf16, b_ref f32.
    h = jnp.dot(x_ref[...], w_ref[...],
                preferred_element_type=jnp.float32) + b_ref[...]
    # Lane-aligned (multiple-of-128) slices of the fused result.
    q_ref[...] = h[:, :d_pad].astype(q_ref.dtype)
    k_ref[...] = h[:, d_pad:2 * d_pad].astype(k_ref.dtype)
    v_ref[...] = h[:, 2 * d_pad:].astype(v_ref.dtype)


# --------------------------------------------------------------------------
# Kernel 2: flash attention (online softmax) + fused output projection
# --------------------------------------------------------------------------
def _flash_attn_proj_kernel(q_ref, k_ref, v_ref, w1_ref, b1_ref, o_ref,
                            m_sc, l_sc, acc_sc):
    ki = pl.program_id(2)

    @pl.when(ki == 0)
    def _():
        m_sc[...] = jnp.full_like(m_sc, -jnp.inf)
        l_sc[...] = jnp.zeros_like(l_sc)
        acc_sc[...] = jnp.zeros_like(acc_sc)

    q = q_ref[0]                                   # (TQ, d_pad) bf16, pre-scaled
    k = k_ref[0]                                   # (TK, d_pad) bf16
    # q @ k^T via contraction on the feature axis (no materialized transpose).
    s = lax.dot_general(q, k, (((1,), (1,)), ((), ())),
                        preferred_element_type=jnp.float32)     # (TQ, TK) f32

    m_prev = m_sc[...]
    m_new = jnp.maximum(m_prev, jnp.max(s, axis=-1, keepdims=True))
    alpha = jnp.exp(m_prev - m_new)
    p = jnp.exp(s - m_new)
    l_sc[...] = alpha * l_sc[...] + jnp.sum(p, axis=-1, keepdims=True)
    acc_sc[...] = alpha * acc_sc[...] + jnp.dot(
        p.astype(v_ref.dtype), v_ref[0], preferred_element_type=jnp.float32)
    m_sc[...] = m_new

    @pl.when(ki == pl.num_programs(2) - 1)
    def _():
        # Deferred normalization: EUP reciprocal + TQ*d_pad multiplies instead
        # of TQ*n VPU divides.
        inv_l = pl.reciprocal(l_sc[...], approx=True)
        o = (acc_sc[...] * inv_l).astype(w1_ref.dtype)           # (TQ, d_pad)
        out = jnp.dot(o, w1_ref[...],
                      preferred_element_type=jnp.float32) + b1_ref[...]
        o_ref[...] = out[None].astype(o_ref.dtype)


# --------------------------------------------------------------------------
# Wrapper
# --------------------------------------------------------------------------
def attention_forward(x, params, *, heads=1, compute_dtype=jnp.bfloat16):
    """Pallas TPU forward for the PyTorch `Attention` module (eval mode).

    x: (b, n, dim). Weights stored (in_features, out_features), i.e. transposed
    relative to torch Linear's (out, in).
    """
    # TODO(synk): multi-head (heads > 1) path not implemented — the reference
    # module's nn1 layer is only dimensionally consistent for heads == 1.
    assert heads == 1, "Attention reference module is only consistent for heads == 1"
    # TODO(synk): training-mode dropout (do1) omitted — eval / p=0.0 no-op.

    b, n, dim = x.shape
    w1 = params["w1"]
    out_dim = w1.shape[1]
    scale = float(dim) ** -0.5

    d_pad = _round_up(dim, 128)
    o_pad = _round_up(out_dim, 128)
    f32 = jnp.float32

    def pad2(w, rows, cols):
        w = w.astype(f32)
        return jnp.pad(w, ((0, rows - w.shape[0]), (0, cols - w.shape[1])))

    def pad1(v_, cols):
        return jnp.pad(v_.astype(f32), (0, cols - v_.shape[0]))

    # Fold the softmax scale into the q projection (one-time host-side cost,
    # removes the n^2 VPU scale).  Single fused QKV weight slab; zero padding
    # keeps all padded columns exactly zero through both kernels.
    w_qkv = jnp.concatenate([
        pad2(params["wq"] * scale, d_pad, d_pad),
        pad2(params["wk"], d_pad, d_pad),
        pad2(params["wv"], d_pad, d_pad),
    ], axis=1).astype(compute_dtype)                        # (d_pad, 3*d_pad)
    b_qkv = jnp.concatenate([
        pad1(params["bq"] * scale, d_pad),
        pad1(params["bk"], d_pad),
        pad1(params["bv"], d_pad),
    ]).reshape(1, 3 * d_pad)                                # f32
    w1_p = pad2(w1, d_pad, o_pad).astype(compute_dtype)     # (d_pad, o_pad)
    b1_p = pad1(params["b1"], o_pad).reshape(1, o_pad)      # f32

    x_rows = jnp.pad(x.astype(f32), ((0, 0), (0, 0), (0, d_pad - dim)))
    x_rows = x_rows.astype(compute_dtype).reshape(b * n, d_pad)

    itemsize_c = jnp.dtype(compute_dtype).itemsize

    # ---------------- Kernel 1: QKV projection over all rows ----------------
    rows = b * n
    r_tile = _pick_tile(rows, 512)
    proj_resident = 2 * (                        # double-buffered pipeline slots
        r_tile * d_pad * itemsize_c              # x tile
        + d_pad * 3 * d_pad * itemsize_c         # fused QKV weight (resident)
        + 3 * d_pad * 4                          # bias (f32)
        + 3 * r_tile * d_pad * itemsize_c)       # q/k/v output tiles

    q2, k2, v2 = pl.pallas_call(
        functools.partial(_qkv_proj_kernel, d_pad=d_pad),
        out_shape=(jax.ShapeDtypeStruct((rows, d_pad), compute_dtype),
                   jax.ShapeDtypeStruct((rows, d_pad), compute_dtype),
                   jax.ShapeDtypeStruct((rows, d_pad), compute_dtype)),
        grid_spec=pltpu.PrefetchScalarGridSpec(
            num_scalar_prefetch=0,
            grid=(rows // r_tile,),
            in_specs=[
                pl.BlockSpec((r_tile, d_pad), lambda r: (r, 0)),       # x rows
                pl.BlockSpec((d_pad, 3 * d_pad), lambda r: (0, 0)),    # w_qkv
                pl.BlockSpec((1, 3 * d_pad), lambda r: (0, 0)),        # b_qkv
            ],
            out_specs=[
                pl.BlockSpec((r_tile, d_pad), lambda r: (r, 0)),
                pl.BlockSpec((r_tile, d_pad), lambda r: (r, 0)),
                pl.BlockSpec((r_tile, d_pad), lambda r: (r, 0)),
            ],
        ),
        compiler_params=pltpu.CompilerParams(
            dimension_semantics=("parallel",),
            vmem_limit_bytes=_vmem_limit(proj_resident)),
    )(x_rows, w_qkv, b_qkv)

    q3 = q2.reshape(b, n, d_pad)
    k3 = k2.reshape(b, n, d_pad)
    v3 = v2.reshape(b, n, d_pad)

    # ------------- Kernel 2: flash attention + output projection ------------
    tq = _pick_tile(n, 256)
    tk = _pick_tile(n, 512)
    flash_resident = 2 * (
        tq * d_pad * itemsize_c                  # q tile
        + 2 * tk * d_pad * itemsize_c            # k, v tiles
        + d_pad * o_pad * itemsize_c             # w1 (resident)
        + o_pad * 4                              # b1
        + tq * o_pad * x.dtype.itemsize          # out tile
    ) + tq * (d_pad + 2 * 128) * 4               # f32 scratch acc + m/l

    out_p = pl.pallas_call(
        _flash_attn_proj_kernel,
        out_shape=jax.ShapeDtypeStruct((b, n, o_pad), x.dtype),
        grid_spec=pltpu.PrefetchScalarGridSpec(
            num_scalar_prefetch=0,
            grid=(b, n // tq, n // tk),
            in_specs=[
                pl.BlockSpec((1, tq, d_pad), lambda bi, qi, ki: (bi, qi, 0)),  # q
                pl.BlockSpec((1, tk, d_pad), lambda bi, qi, ki: (bi, ki, 0)),  # k
                pl.BlockSpec((1, tk, d_pad), lambda bi, qi, ki: (bi, ki, 0)),  # v
                pl.BlockSpec((d_pad, o_pad), lambda bi, qi, ki: (0, 0)),       # w1
                pl.BlockSpec((1, o_pad), lambda bi, qi, ki: (0, 0)),           # b1
            ],
            out_specs=pl.BlockSpec((1, tq, o_pad),
                                   lambda bi, qi, ki: (bi, qi, 0)),
            scratch_shapes=[
                pltpu.VMEM((tq, 1), jnp.float32),        # m (running max)
                pltpu.VMEM((tq, 1), jnp.float32),        # l (running denom)
                pltpu.VMEM((tq, d_pad), jnp.float32),    # acc (unnormalized o)
            ],
        ),
        compiler_params=pltpu.CompilerParams(
            dimension_semantics=("parallel", "parallel", "arbitrary"),
            vmem_limit_bytes=_vmem_limit(flash_resident)),
    )(q3, k3, v3, w1_p, b1_p)

    # Slice off the zero-padded output lanes.
    return out_p[:, :, :out_dim]


if __name__ == "__main__":
    # Small shapes consistent with the module: batch=2, seq=16, dim=32, out_dim=32.
    b, n, dim, out_dim, heads = 2, 16, 32, 32, 1

    key = jax.random.PRNGKey(0)
    kx, k1, k2, k3 = jax.random.split(key, 4)

    # torch Linear weights (out, in) stored pre-transposed as (in, out).
    wqkv_t = 0.1 * jax.random.normal(k1, (dim, 3 * dim), jnp.float32)
    bqkv = jnp.zeros((3 * dim,), jnp.float32)      # torch inits to_qkv bias to zeros
    w1_t = 0.1 * jax.random.normal(k2, (dim, out_dim), jnp.float32)
    b1 = 0.1 * jax.random.normal(k3, (out_dim,), jnp.float32)
    x = jax.random.normal(kx, (b, n, dim), dtype=jnp.float32)

    params = {
        "wq": wqkv_t[:, :dim],
        "wk": wqkv_t[:, dim:2 * dim],
        "wv": wqkv_t[:, 2 * dim:],
        "bq": bqkv[:dim],
        "bk": bqkv[dim:2 * dim],
        "bv": bqkv[2 * dim:],
        "w1": w1_t,
        "b1": b1,
    }

    out = attention_forward(x, params, heads=heads)
    out = jax.block_until_ready(out)

    # Pure-JAX f32 reference mirroring the PyTorch forward (heads=1, eval dropout).
    scale = float(dim) ** -0.5
    qkv = jnp.einsum("bnd,de->bne", x, wqkv_t) + bqkv
    q_r = qkv[..., :dim]
    k_r = qkv[..., dim:2 * dim]
    v_r = qkv[..., 2 * dim:]
    dots = jnp.einsum("bid,bjd->bij", q_r, k_r) * scale
    attn = jax.nn.softmax(dots, axis=-1)
    o_r = jnp.einsum("bij,bjd->bid", attn, v_r)
    ref = jnp.einsum("bnd,de->bne", o_r, w1_t) + b1

    assert out.shape == (b, n, out_dim), out.shape
    # bf16 MXU operands + approx reciprocal vs f32 reference -> relaxed tolerance.
    err = float(jnp.max(jnp.abs(out - ref)))
    assert jnp.allclose(out, ref, atol=2e-2, rtol=2e-2), f"mismatch vs reference, max abs err={err}"
    print("KERNEL_OK")
</pallas_src>

<mosaic_0001>
module attributes {stable_mosaic.version = 11 : i64} {
  func.func @_qkv_proj_kernel(%arg0: i32, %arg1: memref<32x128xbf16, #tpu.memory_space<vmem>>, %arg2: memref<128x384xbf16, #tpu.memory_space<vmem>>, %arg3: memref<1x384xf32, #tpu.memory_space<vmem>>, %arg4: memref<32x128xbf16, #tpu.memory_space<vmem>>, %arg5: memref<32x128xbf16, #tpu.memory_space<vmem>>, %arg6: memref<32x128xbf16, #tpu.memory_space<vmem>>) attributes {dimension_semantics = [#tpu.dimension_semantics<parallel>], iteration_bounds = array<i64: 1>, scalar_prefetch = 0 : i64, scratch_operands = 0 : i64, tpu.core_type = #tpu.core_type<tc>, window_params = [{transform_indices = @transform_0, window_bounds = array<i64: 32, 128>}, {pipeline_mode = #tpu.pipeline_mode<synchronous>, transform_indices = @transform_1, window_bounds = array<i64: 128, 384>}, {pipeline_mode = #tpu.pipeline_mode<synchronous>, transform_indices = @transform_2, window_bounds = array<i64: 1, 384>}, {transform_indices = @transform_3, window_bounds = array<i64: 32, 128>}, {transform_indices = @transform_4, window_bounds = array<i64: 32, 128>}, {transform_indices = @transform_5, window_bounds = array<i64: 32, 128>}]} {
    %c0 = arith.constant 0 : index
    %c0_0 = arith.constant 0 : index
    %0 = vector.load %arg1[%c0, %c0_0] : memref<32x128xbf16, #tpu.memory_space<vmem>>, vector<32x128xbf16>
    %c0_1 = arith.constant 0 : index
    %c0_2 = arith.constant 0 : index
    %1 = vector.load %arg2[%c0_1, %c0_2] : memref<128x384xbf16, #tpu.memory_space<vmem>>, vector<128x384xbf16>
    %cst = arith.constant dense<0.000000e+00> : vector<32x384xf32>
    %2 = tpu.matmul %0, %1, %cst {dimension_numbers = #tpu.dot_dimension_numbers<[1], [0], [0], [1], [0, 0, 1, 1], [], []>} : vector<32x128xbf16>, vector<128x384xbf16>, vector<32x384xf32> -> vector<32x384xf32>
    %c0_3 = arith.constant 0 : index
    %c0_4 = arith.constant 0 : index
    %3 = vector.load %arg3[%c0_3, %c0_4] : memref<1x384xf32, #tpu.memory_space<vmem>>, vector<1x384xf32>
    %4 = vector.broadcast %3 : vector<1x384xf32> to vector<32x384xf32>
    %5 = arith.addf %2, %4 : vector<32x384xf32>
    %6 = vector.extract_strided_slice %5 {offsets = [0, 0], sizes = [32, 128], strides = [1, 1]} : vector<32x384xf32> to vector<32x128xf32>
    %7 = arith.truncf %6 : vector<32x128xf32> to vector<32x128xbf16>
    %c0_5 = arith.constant 0 : index
    %c0_6 = arith.constant 0 : index
    %8 = vector.load %arg4[%c0_5, %c0_6] : memref<32x128xbf16, #tpu.memory_space<vmem>>, vector<32x128xbf16>
    tpu.vector_store %arg4[%c0_5, %c0_6], %7 {strides = array<i32>} : memref<32x128xbf16, #tpu.memory_space<vmem>>, vector<32x128xbf16>,
    %9 = vector.extract_strided_slice %5 {offsets = [0, 128], sizes = [32, 128], strides = [1, 1]} : vector<32x384xf32> to vector<32x128xf32>
    %10 = arith.truncf %9 : vector<32x128xf32> to vector<32x128xbf16>
    %c0_7 = arith.constant 0 : index
    %c0_8 = arith.constant 0 : index
    %11 = vector.load %arg5[%c0_7, %c0_8] : memref<32x128xbf16, #tpu.memory_space<vmem>>, vector<32x128xbf16>
    tpu.vector_store %arg5[%c0_7, %c0_8], %10 {strides = array<i32>} : memref<32x128xbf16, #tpu.memory_space<vmem>>, vector<32x128xbf16>,
    %12 = vector.extract_strided_slice %5 {offsets = [0, 256], sizes = [32, 128], strides = [1, 1]} : vector<32x384xf32> to vector<32x128xf32>
    %13 = arith.truncf %12 : vector<32x128xf32> to vector<32x128xbf16>
    %c0_9 = arith.constant 0 : index
    %c0_10 = arith.constant 0 : index
    %14 = vector.load %arg6[%c0_9, %c0_10] : memref<32x128xbf16, #tpu.memory_space<vmem>>, vector<32x128xbf16>
    tpu.vector_store %arg6[%c0_9, %c0_10], %13 {strides = array<i32>} : memref<32x128xbf16, #tpu.memory_space<vmem>>, vector<32x128xbf16>,
    return
  }
  func.func @transform_0(%arg0: i32) -> (i32, i32) {
    %c0_i32 = arith.constant 0 : i32
    %c0_i32_0 = arith.constant 0 : i32
    return %arg0, %c0_i32 : i32, i32
  }
  func.func @transform_1(%arg0: i32) -> (i32, i32) {
    %c0_i32 = arith.constant 0 : i32
    %c0_i32_0 = arith.constant 0 : i32
    %c0_i32_1 = arith.constant 0 : i32
    return %c0_i32, %c0_i32_0 : i32, i32
  }
  func.func @transform_2(%arg0: i32) -> (i32, i32) {
    %c0_i32 = arith.constant 0 : i32
    %c0_i32_0 = arith.constant 0 : i32
    %c0_i32_1 = arith.constant 0 : i32
    return %c0_i32, %c0_i32_0 : i32, i32
  }
  func.func @transform_3(%arg0: i32) -> (i32, i32) {
    %c0_i32 = arith.constant 0 : i32
    %c0_i32_0 = arith.constant 0 : i32
    return %arg0, %c0_i32 : i32, i32
  }
  func.func @transform_4(%arg0: i32) -> (i32, i32) {
    %c0_i32 = arith.constant 0 : i32
    %c0_i32_0 = arith.constant 0 : i32
    return %arg0, %c0_i32 : i32, i32
  }
  func.func @transform_5(%arg0: i32) -> (i32, i32) {
    %c0_i32 = arith.constant 0 : i32
    %c0_i32_0 = arith.constant 0 : i32
    return %arg0, %c0_i32 : i32, i32
  }
}

</mosaic_0001>

<bundles_post_ra>
// kernel: tpu_custom_call.1
= control target key start
LH: loop header
LB: loop body
LE: loop exit
PB: predicated region body
PF: predicated region fallthrough
CT: control target
= control target key end

     0   :  { %11 = vsyncpa [#allocation3], 0  ;;  %s787_s0 = inlined_call_operand.hbm [shape: bf16[32,128], index: 0, kind: input, shape index: {}]   ;;  %s788_s1 = inlined_call_operand.hbm [shape: bf16[128,384], index: 1, kind: input, shape index: {}]   ;;  %s789_s2 = inlined_call_operand.hbm [shape: f32[1,384], index: 2, kind: input, shape index: {}]   ;;  %s790_s3 = inlined_call_operand.hbm [shape: bf16[32,128], index: 3, kind: output, shape index: {0}]   ;;  %s791_s4 = inlined_call_operand.hbm [shape: bf16[32,128], index: 4, kind: output, shape index: {1}]   ;;  %s792_s5 = inlined_call_operand.hbm [shape: bf16[32,128], index: 5, kind: output, shape index: {2}]  }
   0x1   :  { %12 = vsyncpa [#allocation6], 0 }
   0x2   :  { %13 = vsyncpa [#allocation4], 0  ;;  %s32_s20 = sshll.u32 %s788_s1, 4  ;;  %s33_s20 = int_to_ptr.hbm [resolvable:$true] %s32_s20 }
   0x3   :  { %14 = vsyncpa [#allocation10], 0  ;;  %s717_s21 = smov [#allocation5]   ;;  %s19_s25 = sshll.u32 %s787_s0, 4  ;;  %s20_s25 = int_to_ptr.hbm [resolvable:$true] %s19_s25 }
   0x4   :  { %s34_s22 = sshll.u32 %s717_s21, 4  ;;  %s718_s26 = smov 192   ;;  %s35_s22 = int_to_ptr.vmem [resolvable:$true] %s34_s22 }
   0x5   :  { %s719_s27 = smov 12   ;;  %s720_s28 = smov [#allocation2]  }
   0x6   :  { %40 = dma.hbm_to_vmem [thread:$0]  %s33_s20, 3072, %s35_s22, [#allocation6], %s718_s26, %s718_s26, %s719_s27  }
   0x7   :  { %s21_s29 = sshll.u32 %s720_s28, 4  ;;  %s721_s30 = smov 64   ;;  %s22_s29 = int_to_ptr.vmem [resolvable:$true] %s21_s29 }
   0x8   :  { %s722_s6 = smov 4   ;;  %s46_s8 = sshll.u32 %s789_s2, 4  ;;  %s47_s8 = int_to_ptr.hbm [resolvable:$true] %s46_s8 }
   0x9   :  { %27 = dma.hbm_to_vmem [thread:$0]  %s20_s25, 256, %s22_s29, [#allocation3], %s721_s30, %s721_s30, %s722_s6  }
   0xa   :  { %s723_s9 = smov [#allocation7]  }
   0xb   :  { %s48_s0 = sshll.u32 %s723_s9, 4  ;;  %s49_s0 = int_to_ptr.vmem [resolvable:$true] %s48_s0 }
   0xc   :  { %51 = dma.hbm_to_vmem [thread:$0]  %s47_s8, 48, %s49_s0, [#allocation6]  }
   0xd   :  { %709 = dma.done.wait [#allocation3], 256  }
   0xe   :  { %710 = vsyncadd [#allocation3], 4294967040 }
   0xf   :  { %711 = dma.done.wait [#allocation6], 3120  }
  0x10   :  { %712 = vsyncadd [#allocation6], 4294964176  ;;  %v511_v0 = vld [vmem:[#allocation5 + $0xac] sm:$0xf]  ;;  %v480_v1 = vld [vmem:[#allocation5 + $0xb4] sm:$0xf0] }
  0x11   :  { %v486_v2 = vld [vmem:[#allocation5 + $0xb0] sm:$0xf]  ;;  %v483_v3 = vor.u32 %v511_v0, %v480_v1  ;;  %v513_v4 = vld [vmem:[#allocation5 + $0xb8] sm:$0xf0]  ;;  %v508_v5 = vld [vmem:[#allocation5 + $0x94] sm:$0xf] }
  0x12   :  { %v468_v6 = vld [vmem:[#allocation5 + $0x9c] sm:$0xf0]  ;;  %v487_v7 = vor.u32 %v513_v4, %v486_v2  ;;  %v474_v8 = vld [vmem:[#allocation5 + $0x98] sm:$0xf]  ;;  %v510_v9 = vld [vmem:[#allocation5 + $0xa0] sm:$0xf0] }
  0x13   :  { %v478_v10 = vld [vmem:[#allocation5 + $0xa8] sm:$0xf]  ;;  %267 = vmatpush.bf16.msra.mxu1 %v483_v3  ;;  %v471_v11 = vor.u32 %v508_v5, %v468_v6  ;;  %v512_v12 = vld [vmem:[#allocation5 + $0xb0] sm:$0xf0]  ;;  %v475_v13 = vor.u32 %v510_v9, %v474_v8  ;;  %v505_v15 = vld [vmem:[#allocation5 + $0x7c] sm:$0xf] }
  0x14   :  { %286 = vmatpush.bf16.msra.mxu2 %v487_v7  ;;  %v479_v14 = vor.u32 %v512_v12, %v478_v10  ;;  %v456_v16 = vld [vmem:[#allocation5 + $0x84] sm:$0xf0]  ;;  %v466_v17 = vld [vmem:[#allocation5 + $0x90] sm:$0xf]  ;;  %v462_v18 = vld [vmem:[#allocation5 + $0x80] sm:$0xf] }
  0x15   :  { %v507_v19 = vld [vmem:[#allocation5 + $0x88] sm:$0xf0]  ;;  %v509_v20 = vld [vmem:[#allocation5 + $0x98] sm:$0xf0]  ;;  %v459_v22 = vor.u32 %v505_v15, %v456_v16  ;;  %v454_v23 = vld [vmem:[#allocation5 + $0x78] sm:$0xf] }
  0x16   :  { %547 = vmatpush.bf16.msra.mxu3 %v479_v14  ;;  %v467_v21 = vor.u32 %v509_v20, %v466_v17  ;;  %248 = vmatpush.bf16.msra.mxu0 %v479_v14  ;;  %v506_v24 = vld [vmem:[#allocation5 + $0x80] sm:$0xf0]  ;;  %v463_v25 = vor.u32 %v507_v19, %v462_v18  ;;  %v444_v27 = vld [vmem:[#allocation5 + $0x6c] sm:$0xf0]  ;;  %v450_v28 = vld [vmem:[#allocation5 + $0x68] sm:$0xf] }
  0x17   :  { %268 = vmatpush.bf16.msra.mxu1 %v471_v11  ;;  %v502_v26 = vld [vmem:[#allocation5 + $0x64] sm:$0xf]  ;;  %v504_v29 = vld [vmem:[#allocation5 + $0x70] sm:$0xf0]  ;;  %v455_v30 = vor.u32 %v506_v24, %v454_v23  ;;  %v442_v32 = vld [vmem:[#allocation5 + $0x60] sm:$0xf] }
  0x18   :  { %287 = vmatpush.bf16.msra.mxu2 %v475_v13  ;;  %v447_v31 = vor.u32 %v502_v26, %v444_v27  ;;  %v503_v33 = vld [vmem:[#allocation5 + $0x68] sm:$0xf0]  ;;  %v451_v34 = vor.u32 %v504_v29, %v450_v28  ;;  %v432_v36 = vld [vmem:[#allocation5 + $0x54] sm:$0xf0]  ;;  %v438_v37 = vld [vmem:[#allocation5 + $0x50] sm:$0xf] }
  0x19   :  { %v499_v35 = vld [vmem:[#allocation5 + $0x4c] sm:$0xf]  ;;  %v501_v38 = vld [vmem:[#allocation5 + $0x58] sm:$0xf0]  ;;  %v443_v39 = vor.u32 %v503_v33, %v442_v32  ;;  %v430_v41 = vld [vmem:[#allocation5 + $0x48] sm:$0xf] }
  0x1a   :  { %548 = vmatpush.bf16.msra.mxu3 %v467_v21  ;;  %249 = vmatpush.bf16.msra.mxu0 %v467_v21  ;;  %v435_v40 = vor.u32 %v499_v35, %v432_v36  ;;  %v500_v42 = vld [vmem:[#allocation5 + $0x50] sm:$0xf0]  ;;  %v439_v43 = vor.u32 %v501_v38, %v438_v37  ;;  %v420_v45 = vld [vmem:[#allocation5 + $0x3c] sm:$0xf0]  ;;  %v426_v46 = vld [vmem:[#allocation5 + $0x38] sm:$0xf] }
  0x1b   :  { %269 = vmatpush.bf16.msra.mxu1 %v459_v22  ;;  %v496_v44 = vld [vmem:[#allocation5 + $0x34] sm:$0xf]  ;;  %v498_v47 = vld [vmem:[#allocation5 + $0x40] sm:$0xf0]  ;;  %v431_v48 = vor.u32 %v500_v42, %v430_v41  ;;  %v418_v50 = vld [vmem:[#allocation5 + $0x30] sm:$0xf] }
  0x1c   :  { %288 = vmatpush.bf16.msra.mxu2 %v463_v25  ;;  %v423_v49 = vor.u32 %v496_v44, %v420_v45  ;;  %v497_v51 = vld [vmem:[#allocation5 + $0x38] sm:$0xf0]  ;;  %v427_v52 = vor.u32 %v498_v47, %v426_v46  ;;  %v408_v54 = vld [vmem:[#allocation5 + $0x24] sm:$0xf0]  ;;  %v414_v55 = vld [vmem:[#allocation5 + $0x20] sm:$0xf] }
  0x1d   :  { %v493_v53 = vld [vmem:[#allocation5 + $0x1c] sm:$0xf]  ;;  %v495_v56 = vld [vmem:[#allocation5 + $0x28] sm:$0xf0]  ;;  %v419_v57 = vor.u32 %v497_v51, %v418_v50  ;;  %v406_v59 = vld [vmem:[#allocation5 + $0x18] sm:$0xf] }
  0x1e   :  { %549 = vmatpush.bf16.msra.mxu3 %v455_v30  ;;  %250 = vmatpush.bf16.msra.mxu0 %v455_v30  ;;  %v411_v58 = vor.u32 %v493_v53, %v408_v54  ;;  %v494_v60 = vld [vmem:[#allocation5 + $0x20] sm:$0xf0]  ;;  %v415_v61 = vor.u32 %v495_v56, %v414_v55  ;;  %v396_v63 = vld [vmem:[#allocation5 + $0xc] sm:$0xf0]  ;;  %v402_v0 = vld [vmem:[#allocation5 + $0x8] sm:$0xf] }
  0x1f   :  { %270 = vmatpush.bf16.msra.mxu1 %v447_v31  ;;  %v490_v62 = vld [vmem:[#allocation5 + $0x4] sm:$0xf]  ;;  %v492_v1 = vld [vmem:[#allocation5 + $0x10] sm:$0xf0]  ;;  %v407_v2 = vor.u32 %v494_v60, %v406_v59  ;;  %v394_v4 = vld [vmem:[#allocation5] sm:$0xf] }
  0x20   :  { %289 = vmatpush.bf16.msra.mxu2 %v451_v34  ;;  %v399_v3 = vor.u32 %v490_v62, %v396_v63  ;;  %v491_v5 = vld [vmem:[#allocation5 + $0x8] sm:$0xf0]  ;;  %v403_v6 = vor.u32 %v492_v1, %v402_v0  ;;  %v488_v7 = vld [vmem:[#allocation2] sm:$0xff]  ;;  %v489_v9 = vld [vmem:[#allocation2 + $0x8] sm:$0xff]  ;;  %s724_s2 = smov [#allocation8]   ;;  %s335_s13 = sshll.u32 %s790_s3, 4  ;;  %s336_s13 = int_to_ptr.hbm [resolvable:$true] %s335_s13 }
  0x21   :  { %v395_v8 = vor.u32 %v491_v5, %v394_v4  ;;  %v100_v11 = vld [vmem:[#allocation7] sm:$0x7]  ;;  %s333_s10 = sshll.u32 %s724_s2, 4  ;;  %s725_s14 = smov [#allocation9]   ;;  %s334_s10 = int_to_ptr.vmem [resolvable:$true] %s333_s10 }
  0x22   :  { %550 = vmatpush.bf16.msra.mxu3 %v443_v39  ;;  %251 = vmatpush.bf16.msra.mxu0 %v443_v39  ;;  %v103_v13 = vperm.slane %v100_v11, 1  ;;  %v102_v15 = vperm.slane %v100_v11, 0  ;;  %v104_v22 = vperm.slane %v100_v11, 2  ;;  %s346_s15 = sshll.u32 %s725_s14, 4  ;;  %s348_s18 = sshll.u32 %s791_s4, 4  ;;  %s347_s15 = int_to_ptr.vmem [resolvable:$true] %s346_s15  ;;  %s349_s18 = int_to_ptr.hbm [resolvable:$true] %s348_s18 }
  0x23   :  { %271 = vmatpush.bf16.msra.mxu1 %v435_v40  ;;  %s726_s3 = smov [#allocation11]   ;;  %s361_s22 = sshll.u32 %s792_s5, 4  ;;  %s362_s22 = int_to_ptr.hbm [resolvable:$true] %s361_s22 }
  0x24   :  { %290 = vmatpush.bf16.msra.mxu2 %v439_v43  ;;  %s359_s19 = sshll.u32 %s726_s3, 4  ;;  %s360_s19 = int_to_ptr.vmem [resolvable:$true] %s359_s19 }
  0x26   :  { %551 = vmatpush.bf16.msra.mxu3 %v431_v48  ;;  %252 = vmatpush.bf16.msra.mxu0 %v431_v48 }
  0x27   :  { %272 = vmatpush.bf16.msra.mxu1 %v423_v49 }
  0x28   :  { %291 = vmatpush.bf16.msra.mxu2 %v427_v52 }
  0x2a   :  { %552 = vmatpush.bf16.msra.mxu3 %v419_v57  ;;  %253 = vmatpush.bf16.msra.mxu0 %v419_v57 }
  0x2b   :  { %273 = vmatpush.bf16.msra.mxu1 %v411_v58 }
  0x2c   :  { %292 = vmatpush.bf16.msra.mxu2 %v415_v61 }
  0x2e   :  { %553 = vmatpush.bf16.msra.mxu3 %v407_v2  ;;  %254 = vmatpush.bf16.msra.mxu0 %v407_v2 }
  0x2f   :  { %274 = vmatpush.bf16.msra.mxu1 %v399_v3 }
  0x30   :  { %293 = vmatpush.bf16.msra.mxu2 %v403_v6 }
  0x32   :  { %275 = vmatmul.bf16.vlgmr.msra.gmra.mxu1 %v488_v7  ;;  %554 = vmatpush.bf16.msra.mxu3 %v395_v8 }
  0x33   :  { %294 = vmatmul.bf16.vlgmr.msra.gmra.mxu2 %v488_v7  ;;  %255 = vmatpush.bf16.msra.mxu0 %v395_v8 }
  0x35   :  { %261 = vmatmul.bf16.vlgmr.msra.gmra.mxu3 %v489_v9 }
  0x36   :  { %256 = vmatmul.bf16.vlgmr.msra.gmra.mxu0 %v488_v7 }
  0x42   :  { %280 = vmatmul.bf16.gmra.mxu1 %v489_v9 }
  0x43   :  { %299 = vmatmul.bf16.gmra.mxu2 %v489_v9 }
  0xaf   :  { %v276_v10 = vpop.f32.mrf.mxu1 }
  0xb0   :  { %v277_v17 = vadd.f32 %v276_v10, %v103_v13 }
  0xb3   :  { %v257_v12 = vpop.f32.mrf.mxu0 }
  0xb4   :  { %v258_v21 = vadd.f32 %v257_v12, %v102_v15 }
  0xb6   :  { %v295_v14 = vpop.f32.mrf.mxu2 }
  0xb7   :  { %v278_v16 = vpop.f32.mrf.mxu1  ;;  %v296_v27 = vadd.f32 %v295_v14, %v104_v22 }
  0xb8   :  { %v279_v18 = vadd.f32 %v278_v16, %v103_v13  ;;  %v262_v19 = vpop.f32.mrf.mxu3 }
  0xb9   :  { %v263_v28 = vadd.f32 %v262_v19, %v102_v15 }
  0xba   :  { %v527_v20 = vpack.c.bf16 %v279_v18, %v277_v17 }
  0xbb   :  { %v259_v23 = vpop.f32.mrf.mxu0 }
  0xbc   :  { %528 = vst [vmem:[#allocation9] sm:$0xff] %v527_v20   ;;  %v260_v24 = vadd.f32 %v259_v23, %v102_v15 }
  0xbe   :  { %v297_v25 = vpop.f32.mrf.mxu2  ;;  %v517_v26 = vpack.c.bf16 %v260_v24, %v258_v21 }
  0xbf   :  { %v298_v29 = vadd.f32 %v297_v25, %v104_v22  ;;  %v281_v30 = vpop.f32.mrf.mxu1 }
  0xc0   :  { %518 = vst [vmem:[#allocation8] sm:$0xff] %v517_v26   ;;  %v264_v31 = vpop.f32.mrf.mxu3  ;;  %v282_v37 = vadd.f32 %v281_v30, %v103_v13 }
  0xc1   :  { %v537_v32 = vpack.c.bf16 %v298_v29, %v296_v27  ;;  %v265_v33 = vadd.f32 %v264_v31, %v102_v15 }
  0xc3   :  { %538 = vst [vmem:[#allocation11] sm:$0xff] %v537_v32   ;;  %v522_v34 = vpack.c.bf16 %v265_v33, %v263_v28 }
  0xc5   :  { %544 = vst [vmem:[#allocation8 + $0x8] sm:$0xff] %v522_v34  }
  0xc6   :  { %v300_v35 = vpop.f32.mrf.mxu2  ;;  %341 = dma.vmem_to_hbm [thread:$0]  %s334_s10, 256, %s336_s13, [#allocation4], %s721_s30, %s721_s30, %s722_s6  }
  0xc7   :  { %v283_v36 = vpop.f32.mrf.mxu1  ;;  %v301_v41 = vadd.f32 %v300_v35, %v104_v22 }
  0xc8   :  { %v284_v38 = vadd.f32 %v283_v36, %v103_v13 }
  0xca   :  { %v532_v39 = vpack.c.bf16 %v284_v38, %v282_v37 }
  0xcc   :  { %545 = vst [vmem:[#allocation9 + $0x8] sm:$0xff] %v532_v39  }
  0xcd   :  { %354 = dma.vmem_to_hbm [thread:$0]  %s347_s15, 256, %s349_s18, [#allocation10], %s721_s30, %s721_s30, %s722_s6  }
  0xce   :  { %v302_v40 = vpop.f32.mrf.mxu2 }
  0xcf   :  { %v303_v42 = vadd.f32 %v302_v40, %v104_v22 }
  0xd1   :  { %v542_v43 = vpack.c.bf16 %v303_v42, %v301_v41 }
  0xd3   :  { %546 = vst [vmem:[#allocation11 + $0x8] sm:$0xff] %v542_v43  }
  0xd4   :  { %367 = dma.vmem_to_hbm [thread:$0]  %s360_s19, 256, %s362_s22, [#allocation10], %s721_s30, %s721_s30, %s722_s6  }
  0xd5   :  { %713 = dma.done.wait [#allocation4], 256  }
  0xd6   :  { %714 = vsyncadd [#allocation4], 4294967040 }
  0xd7   :  { %715 = dma.done.wait [#allocation10], 512  }
  0xd8   :  { %716 = vsyncadd [#allocation10], 4294966784 }
  0xd9   :  { %380 = vsyncpa [#allocation3], 1 }
  0xda   :  { %381 = vsyncpa [#allocation6], 1 }
  0xdb   :  { %382 = vsyncpa [#allocation4], 1 }
  0xdc   :  { %383 = vsyncpa [#allocation10], 1 }

</bundles_post_ra>
